<compile_context>
chip_gen: v6e
topology: v6e:2x2x1
jax: 0.10.0
libtpu: 0.0.40
codegen_flags: <defaults>
</compile_context>

<pallas_src>
import numpy as np
import jax
import jax.numpy as jnp
from jax.experimental import pallas as pl
from jax.experimental.pallas import tpu as pltpu

_LN_EPS = 1e-5


def _conv_taps(H, W, Cp):
    """Pre-rolled boundary masks + lane shifts for a 3x3 pad=1 conv.

    mask_full : (9*Cp, H*W) f32.  Rows [k*Cp:(k+1)*Cp] hold tap-k's validity mask,
                pre-rolled by +s_k so it can be applied BEFORE the lane rotation
                (roll(Y*mask_pre, -s_k)[p] == mask_orig[p] * Y[p+s_k]).
    shifts    : 9 signed lane shifts s_k = (dy-1)*W + (dx-1).
    """
    HW = H * W
    p = np.arange(HW)
    h, w = p // W, p % W
    rows, shifts = [], []
    for dy in range(3):
        for dx in range(3):
            s = (dy - 1) * W + (dx - 1)
            shifts.append(s)
            ok = ((h + dy - 1 >= 0) & (h + dy - 1 < H) &
                  (w + dx - 1 >= 0) & (w + dx - 1 < W)).astype(np.float32)
            rows.append(np.repeat(np.roll(ok, s)[None, :], Cp, axis=0))
    return jnp.asarray(np.concatenate(rows, axis=0)), tuple(shifts)


def _make_kernel(H, W, Cin, Cp, NB, shifts):
    HW = H * W
    inv_hw = 1.0 / HW
    KT = 9 * Cp                     # rows of the tap-stacked matmul result

    def tap_sum(taps):
        # taps: (9*Cp, HW), already boundary-masked.  Rotate each (Cp, HW) slab into
        # place with the (otherwise idle) XLU and accumulate.  Static slices at
        # multiples of Cp=8 sublanes are free views.
        acc = None
        for k in range(9):
            slab = taps[k * Cp:(k + 1) * Cp, :]
            sh = (-shifts[k]) % HW          # pltpu.roll == jnp.roll semantics
            if sh:
                slab = pltpu.roll(slab, shift=sh, axis=1)
            acc = slab if acc is None else acc + slab
        return acc

    def layernorm(y, gamma, beta):
        # Per-row LayerNorm over HW lanes; sum and sum-of-squares fused into ONE
        # cross-lane reduction pass by stacking on sublanes.
        R = y.shape[0]
        sums = jnp.sum(jnp.concatenate([y, y * y], axis=0), axis=1, keepdims=True)
        mu = sums[:R] * inv_hw
        var = jnp.maximum(sums[R:] * inv_hw - mu * mu, 0.0)   # clamp: no NaN on rsqrt
        return (y - mu) * jax.lax.rsqrt(var + _LN_EPS) * gamma + beta

    def kernel(x_ref, mask_ref, lhs1_ref, lhs2_ref, g1s_ref, b1s_ref,
               g2_ref, b2_ref, o_ref):
        mask = mask_ref[...]
        lhs1 = lhs1_ref[...]
        lhs2 = lhs2_ref[...]
        for b in range(NB):                       # static unroll over per-step images
            x = x_ref[b].astype(jnp.bfloat16)     # (Cin, HW)

            # conv1 taps + 1x1 shortcut in ONE MXU push: (9*Cp + Cp, Cin) @ (Cin, HW)
            y_all = jnp.dot(lhs1, x, preferred_element_type=jnp.float32)
            conv1 = tap_sum(y_all[:KT, :] * mask)                 # (Cp, HW)

            # conv1-LN and shortcut-LN vectorized as one 2*Cp-row pass
            pre = jnp.concatenate([conv1, y_all[KT:, :]], axis=0)  # (2*Cp, HW)
            nrm = layernorm(pre, g1s_ref[...], b1s_ref[...])
            y1 = jnp.maximum(nrm[:Cp, :], 0.0)                     # relu(LN1(conv1))
            sc = nrm[Cp:, :]                                       # LN3(shortcut)

            # conv2: (9*Cp, Cp) @ (Cp, HW), mask, rotate-accumulate, LN2
            taps2 = jnp.dot(lhs2, y1.astype(jnp.bfloat16),
                            preferred_element_type=jnp.float32) * mask
            y2 = layernorm(tap_sum(taps2), g2_ref[...], b2_ref[...])

            o_ref[b] = jnp.maximum(y2 + sc, 0.0).astype(o_ref.dtype)

    return kernel


def prepare_params(params, H, W):
    """One-time (init-time) prep: tap-stack conv weights as bf16, build pre-rolled
    masks, pre-expand LayerNorm affine params — all hoisted out of the hot path."""
    Cin = params["w1"].shape[2]
    Cp = params["w1"].shape[3]
    HW = H * W

    # Tap-stacked conv weights: rows [k*Cp:(k+1)*Cp] hold W_k = w[dy,dx,:,:]^T.
    w1_taps = jnp.transpose(params["w1"], (0, 1, 3, 2)).reshape(9 * Cp, Cin)
    w2_taps = jnp.transpose(params["w2"], (0, 1, 3, 2)).reshape(9 * Cp, Cp)
    lhs1 = jnp.concatenate([w1_taps, params["wsc"].T], axis=0).astype(jnp.bfloat16)
    lhs2 = w2_taps.astype(jnp.bfloat16)

    mask_full, shifts = _conv_taps(H, W, Cp)

    bc = lambda v: jnp.broadcast_to(v[None, :], (Cp, HW)).astype(jnp.float32)
    g1s = jnp.concatenate([bc(params["g1"]), bc(params["g3"])], axis=0)   # (2Cp, HW)
    b1s = jnp.concatenate([bc(params["b1"]), bc(params["b3"])], axis=0)
    g2, b2 = bc(params["g2"]), bc(params["b2"])

    return dict(lhs1=lhs1, lhs2=lhs2, mask=mask_full, g1s=g1s, b1s=b1s,
                g2=g2, b2=b2, shifts=shifts, Cin=Cin, Cp=Cp, H=H, W=W)


def residual_block(x_nchw, prep, grid_steps=None):
    # TODO(synk): stride > 1 and the identity-shortcut (in_planes == planes) path of
    # the PyTorch module are not implemented; this covers stride=1 + projection.
    N, Cin, H, W = x_nchw.shape
    Cp, HW = prep["Cp"], H * W
    assert Cin == prep["Cin"] and H == prep["H"] and W == prep["W"]

    # Few, fat grid steps: 2 keeps both v7x TensorCores busy; on single-TC v5e/v6e
    # pass grid_steps=1 (the extra step only costs ~0.35us).
    G = min(N, 2) if grid_steps is None else grid_steps
    assert N % G == 0
    NB = N // G

    x_flat = x_nchw.reshape(N, Cin, HW)            # free reshape: spatial -> lanes
    const2 = lambda g: (0, 0)

    kernel = _make_kernel(H, W, Cin, Cp, NB, prep["shifts"])
    out_flat = pl.pallas_call(
        kernel,
        grid=(G,),
        out_shape=jax.ShapeDtypeStruct((N, Cp, HW), jnp.float32),
        in_specs=[
            pl.BlockSpec((NB, Cin, HW), lambda g: (g, 0, 0)),   # x (NB images / step)
            pl.BlockSpec((9 * Cp, HW), const2),                 # pre-rolled masks
            pl.BlockSpec((10 * Cp, Cin), const2),               # conv1 taps + 1x1 sc
            pl.BlockSpec((9 * Cp, Cp), const2),                 # conv2 taps
            pl.BlockSpec((2 * Cp, HW), const2),                 # LN1+LN3 gamma
            pl.BlockSpec((2 * Cp, HW), const2),                 # LN1+LN3 beta
            pl.BlockSpec((Cp, HW), const2),                     # LN2 gamma
            pl.BlockSpec((Cp, HW), const2),                     # LN2 beta
        ],
        out_specs=pl.BlockSpec((NB, Cp, HW), lambda g: (g, 0, 0)),
        compiler_params=pltpu.CompilerParams(
            dimension_semantics=("parallel",)),
    )(x_flat, prep["mask"], prep["lhs1"], prep["lhs2"],
      prep["g1s"], prep["b1s"], prep["g2"], prep["b2"])

    return out_flat.reshape(N, Cp, H, W)           # free reshape back to NCHW


def _reference(x, p):
    # pure-JAX f32 reference in NCHW, mirroring the PyTorch forward
    def conv(inp, w, pad):
        return jax.lax.conv_general_dilated(
            inp, w, window_strides=(1, 1), padding=pad,
            dimension_numbers=("NCHW", "HWIO", "NCHW"))

    def ln(y, g, b):
        Nn, Cc, Hh, Ww = y.shape
        yf = y.reshape(Nn, Cc, Hh * Ww)
        mu = jnp.mean(yf, axis=-1, keepdims=True)
        var = jnp.mean((yf - mu) ** 2, axis=-1, keepdims=True)
        yn = (yf - mu) / jnp.sqrt(var + _LN_EPS)
        return (yn * g + b).reshape(Nn, Cc, Hh, Ww)

    out = jax.nn.relu(ln(conv(x, p["w1"], ((1, 1), (1, 1))), p["g1"], p["b1"]))
    out = ln(conv(out, p["w2"], ((1, 1), (1, 1))), p["g2"], p["b2"])
    sc = ln(conv(x, p["wsc"][None, None], ((0, 0), (0, 0))), p["g3"], p["b3"])
    return jax.nn.relu(out + sc)


if __name__ == "__main__":
    N, Cin, Cp, H, W = 2, 4, 8, 16, 16   # in_planes=4, planes=8, batchnorm=[256]*3
    key = jax.random.PRNGKey(0)
    ks = jax.random.split(key, 10)

    x = jax.random.normal(ks[0], (N, Cin, H, W), jnp.float32)

    # deterministic synthetic parameters (conv weights stored HWIO)
    params = {
        "w1": jax.random.normal(ks[1], (3, 3, Cin, Cp), jnp.float32) / (3 * 3 * Cin) ** 0.5,
        "w2": jax.random.normal(ks[2], (3, 3, Cp, Cp), jnp.float32) / (3 * 3 * Cp) ** 0.5,
        "wsc": jax.random.normal(ks[3], (Cin, Cp), jnp.float32) / Cin ** 0.5,
        "g1": 1.0 + 0.1 * jax.random.normal(ks[4], (H * W,), jnp.float32),
        "b1": 0.1 * jax.random.normal(ks[5], (H * W,), jnp.float32),
        "g2": 1.0 + 0.1 * jax.random.normal(ks[6], (H * W,), jnp.float32),
        "b2": 0.1 * jax.random.normal(ks[7], (H * W,), jnp.float32),
        "g3": 1.0 + 0.1 * jax.random.normal(ks[8], (H * W,), jnp.float32),
        "b3": 0.1 * jax.random.normal(ks[9], (H * W,), jnp.float32),
    }

    prep = prepare_params(params, H, W)              # one-time weight/mask prep
    fwd = jax.jit(lambda xx: residual_block(xx, prep))

    out = jax.block_until_ready(fwd(x))
    ref = _reference(x, params)

    assert out.shape == (N, Cp, H, W)
    assert bool(jnp.all(jnp.isfinite(out)))
    max_abs = float(jnp.max(jnp.abs(out - ref)))
    rel = max_abs / (float(jnp.max(jnp.abs(ref))) + 1e-12)
    # bf16 MXU inputs (f32 accumulation) vs f32 XLA conv reference
    assert rel < 0.03, f"rel_err={rel:.4f} (abs={max_abs:.4f})"

    print("KERNEL_OK")
</pallas_src>

<mosaic_0001>
module attributes {stable_mosaic.version = 11 : i64} {
  func.func @kernel(%arg0: i32, %arg1: memref<1x4x256xf32, #tpu.memory_space<vmem>>, %arg2: memref<72x256xf32, #tpu.memory_space<vmem>>, %arg3: memref<80x4xbf16, #tpu.memory_space<vmem>>, %arg4: memref<72x8xbf16, #tpu.memory_space<vmem>>, %arg5: memref<16x256xf32, #tpu.memory_space<vmem>>, %arg6: memref<16x256xf32, #tpu.memory_space<vmem>>, %arg7: memref<8x256xf32, #tpu.memory_space<vmem>>, %arg8: memref<8x256xf32, #tpu.memory_space<vmem>>, %arg9: memref<1x8x256xf32, #tpu.memory_space<vmem>>) attributes {dimension_semantics = [#tpu.dimension_semantics<parallel>], iteration_bounds = array<i64: 2>, scalar_prefetch = 0 : i64, scratch_operands = 0 : i64, tpu.core_type = #tpu.core_type<tc>, window_params = [{transform_indices = @transform_0, window_bounds = array<i64: 1, 4, 256>}, {pipeline_mode = #tpu.pipeline_mode<synchronous>, transform_indices = @transform_1, window_bounds = array<i64: 72, 256>}, {pipeline_mode = #tpu.pipeline_mode<synchronous>, transform_indices = @transform_2, window_bounds = array<i64: 80, 4>}, {pipeline_mode = #tpu.pipeline_mode<synchronous>, transform_indices = @transform_3, window_bounds = array<i64: 72, 8>}, {pipeline_mode = #tpu.pipeline_mode<synchronous>, transform_indices = @transform_4, window_bounds = array<i64: 16, 256>}, {pipeline_mode = #tpu.pipeline_mode<synchronous>, transform_indices = @transform_5, window_bounds = array<i64: 16, 256>}, {pipeline_mode = #tpu.pipeline_mode<synchronous>, transform_indices = @transform_6, window_bounds = array<i64: 8, 256>}, {pipeline_mode = #tpu.pipeline_mode<synchronous>, transform_indices = @transform_7, window_bounds = array<i64: 8, 256>}, {transform_indices = @transform_8, window_bounds = array<i64: 1, 8, 256>}]} {
    %c0 = arith.constant 0 : index
    %c0_0 = arith.constant 0 : index
    %0 = vector.load %arg2[%c0, %c0_0] : memref<72x256xf32, #tpu.memory_space<vmem>>, vector<72x256xf32>
    %c0_1 = arith.constant 0 : index
    %c0_2 = arith.constant 0 : index
    %1 = vector.load %arg3[%c0_1, %c0_2] : memref<80x4xbf16, #tpu.memory_space<vmem>>, vector<80x4xbf16>
    %c0_3 = arith.constant 0 : index
    %c0_4 = arith.constant 0 : index
    %2 = vector.load %arg4[%c0_3, %c0_4] : memref<72x8xbf16, #tpu.memory_space<vmem>>, vector<72x8xbf16>
    %c0_5 = arith.constant 0 : index
    %c0_6 = arith.constant 0 : index
    %c0_7 = arith.constant 0 : index
    %3 = vector.load %arg1[%c0_5, %c0_6, %c0_7] : memref<1x4x256xf32, #tpu.memory_space<vmem>>, vector<1x4x256xf32>
    %4 = vector.shape_cast %3 : vector<1x4x256xf32> to vector<4x256xf32>
    %5 = arith.truncf %4 : vector<4x256xf32> to vector<4x256xbf16>
    %cst = arith.constant dense<0.000000e+00> : vector<80x256xf32>
    %6 = tpu.matmul %1, %5, %cst {dimension_numbers = #tpu.dot_dimension_numbers<[1], [0], [0], [1], [0, 0, 1, 1], [], []>} : vector<80x4xbf16>, vector<4x256xbf16>, vector<80x256xf32> -> vector<80x256xf32>
    %7 = vector.extract_strided_slice %6 {offsets = [0, 0], sizes = [72, 256], strides = [1, 1]} : vector<80x256xf32> to vector<72x256xf32>
    %8 = arith.mulf %7, %0 : vector<72x256xf32>
    %9 = vector.extract_strided_slice %8 {offsets = [0, 0], sizes = [8, 256], strides = [1, 1]} : vector<72x256xf32> to vector<8x256xf32>
    %c17_i32 = arith.constant 17 : i32
    %10 = tpu.dynamic_rotate %9 by %c17_i32 dim 1 : vector<8x256xf32>, i32 -> vector<8x256xf32>
    %11 = vector.extract_strided_slice %8 {offsets = [8, 0], sizes = [8, 256], strides = [1, 1]} : vector<72x256xf32> to vector<8x256xf32>
    %c16_i32 = arith.constant 16 : i32
    %12 = tpu.dynamic_rotate %11 by %c16_i32 dim 1 : vector<8x256xf32>, i32 -> vector<8x256xf32>
    %13 = arith.addf %10, %12 : vector<8x256xf32>
    %14 = vector.extract_strided_slice %8 {offsets = [16, 0], sizes = [8, 256], strides = [1, 1]} : vector<72x256xf32> to vector<8x256xf32>
    %c15_i32 = arith.constant 15 : i32
    %15 = tpu.dynamic_rotate %14 by %c15_i32 dim 1 : vector<8x256xf32>, i32 -> vector<8x256xf32>
    %16 = arith.addf %13, %15 : vector<8x256xf32>
    %17 = vector.extract_strided_slice %8 {offsets = [24, 0], sizes = [8, 256], strides = [1, 1]} : vector<72x256xf32> to vector<8x256xf32>
    %c1_i32 = arith.constant 1 : i32
    %18 = tpu.dynamic_rotate %17 by %c1_i32 dim 1 : vector<8x256xf32>, i32 -> vector<8x256xf32>
    %19 = arith.addf %16, %18 : vector<8x256xf32>
    %20 = vector.extract_strided_slice %8 {offsets = [32, 0], sizes = [8, 256], strides = [1, 1]} : vector<72x256xf32> to vector<8x256xf32>
    %21 = arith.addf %19, %20 : vector<8x256xf32>
    %22 = vector.extract_strided_slice %8 {offsets = [40, 0], sizes = [8, 256], strides = [1, 1]} : vector<72x256xf32> to vector<8x256xf32>
    %c255_i32 = arith.constant 255 : i32
    %23 = tpu.dynamic_rotate %22 by %c255_i32 dim 1 : vector<8x256xf32>, i32 -> vector<8x256xf32>
    %24 = arith.addf %21, %23 : vector<8x256xf32>
    %25 = vector.extract_strided_slice %8 {offsets = [48, 0], sizes = [8, 256], strides = [1, 1]} : vector<72x256xf32> to vector<8x256xf32>
    %c241_i32 = arith.constant 241 : i32
    %26 = tpu.dynamic_rotate %25 by %c241_i32 dim 1 : vector<8x256xf32>, i32 -> vector<8x256xf32>
    %27 = arith.addf %24, %26 : vector<8x256xf32>
    %28 = vector.extract_strided_slice %8 {offsets = [56, 0], sizes = [8, 256], strides = [1, 1]} : vector<72x256xf32> to vector<8x256xf32>
    %c240_i32 = arith.constant 240 : i32
    %29 = tpu.dynamic_rotate %28 by %c240_i32 dim 1 : vector<8x256xf32>, i32 -> vector<8x256xf32>
    %30 = arith.addf %27, %29 : vector<8x256xf32>
    %31 = vector.extract_strided_slice %8 {offsets = [64, 0], sizes = [8, 256], strides = [1, 1]} : vector<72x256xf32> to vector<8x256xf32>
    %c239_i32 = arith.constant 239 : i32
    %32 = tpu.dynamic_rotate %31 by %c239_i32 dim 1 : vector<8x256xf32>, i32 -> vector<8x256xf32>
    %33 = arith.addf %30, %32 : vector<8x256xf32>
    %34 = vector.extract_strided_slice %6 {offsets = [72, 0], sizes = [8, 256], strides = [1, 1]} : vector<80x256xf32> to vector<8x256xf32>
    %35 = tpu.concatenate %33, %34 in 0 : vector<8x256xf32>, vector<8x256xf32> -> vector<16x256xf32>
    %c0_8 = arith.constant 0 : index
    %c0_9 = arith.constant 0 : index
    %36 = vector.load %arg5[%c0_8, %c0_9] : memref<16x256xf32, #tpu.memory_space<vmem>>, vector<16x256xf32>
    %c0_10 = arith.constant 0 : index
    %c0_11 = arith.constant 0 : index
    %37 = vector.load %arg6[%c0_10, %c0_11] : memref<16x256xf32, #tpu.memory_space<vmem>>, vector<16x256xf32>
    %38 = arith.mulf %35, %35 : vector<16x256xf32>
    %39 = tpu.concatenate %35, %38 in 0 : vector<16x256xf32>, vector<16x256xf32> -> vector<32x256xf32>
    %cst_12 = arith.constant dense<0.000000e+00> : vector<32xf32>
    %40 = vector.multi_reduction <add>, %39, %cst_12 [1] : vector<32x256xf32> to vector<32xf32>
    %41 = vector.shape_cast %40 : vector<32xf32> to vector<32x1xf32>
    %42 = vector.extract_strided_slice %41 {offsets = [0, 0], sizes = [16, 1], strides = [1, 1]} : vector<32x1xf32> to vector<16x1xf32>
    %cst_13 = arith.constant 3.906250e-03 : f32
    %43 = vector.broadcast %cst_13 : f32 to vector<16x1xf32>
    %44 = arith.mulf %42, %43 : vector<16x1xf32>
    %45 = vector.extract_strided_slice %41 {offsets = [16, 0], sizes = [16, 1], strides = [1, 1]} : vector<32x1xf32> to vector<16x1xf32>
    %cst_14 = arith.constant 3.906250e-03 : f32
    %46 = vector.broadcast %cst_14 : f32 to vector<16x1xf32>
    %47 = arith.mulf %45, %46 : vector<16x1xf32>
    %48 = arith.mulf %44, %44 : vector<16x1xf32>
    %49 = arith.subf %47, %48 : vector<16x1xf32>
    %cst_15 = arith.constant 0.000000e+00 : f32
    %50 = vector.broadcast %cst_15 : f32 to vector<16x1xf32>
    %51 = arith.maximumf %49, %50 : vector<16x1xf32>
    %52 = vector.broadcast %44 : vector<16x1xf32> to vector<16x256xf32>
    %53 = arith.subf %35, %52 : vector<16x256xf32>
    %cst_16 = arith.constant 9.99999974E-6 : f32
    %54 = vector.broadcast %cst_16 : f32 to vector<16x1xf32>
    %55 = arith.addf %51, %54 : vector<16x1xf32>
    %56 = math.rsqrt %55 : vector<16x1xf32>
    %57 = vector.broadcast %56 : vector<16x1xf32> to vector<16x256xf32>
    %58 = arith.mulf %53, %57 : vector<16x256xf32>
    %59 = arith.mulf %58, %36 : vector<16x256xf32>
    %60 = arith.addf %59, %37 : vector<16x256xf32>
    %61 = vector.extract_strided_slice %60 {offsets = [0, 0], sizes = [8, 256], strides = [1, 1]} : vector<16x256xf32> to vector<8x256xf32>
    %cst_17 = arith.constant 0.000000e+00 : f32
    %62 = vector.broadcast %cst_17 : f32 to vector<8x256xf32>
    %63 = arith.maximumf %61, %62 : vector<8x256xf32>
    %64 = vector.extract_strided_slice %60 {offsets = [8, 0], sizes = [8, 256], strides = [1, 1]} : vector<16x256xf32> to vector<8x256xf32>
    %65 = arith.truncf %63 : vector<8x256xf32> to vector<8x256xbf16>
    %cst_18 = arith.constant dense<0.000000e+00> : vector<72x256xf32>
    %66 = tpu.matmul %2, %65, %cst_18 {dimension_numbers = #tpu.dot_dimension_numbers<[1], [0], [0], [1], [0, 0, 1, 1], [], []>} : vector<72x8xbf16>, vector<8x256xbf16>, vector<72x256xf32> -> vector<72x256xf32>
    %67 = arith.mulf %66, %0 : vector<72x256xf32>
    %68 = vector.extract_strided_slice %67 {offsets = [0, 0], sizes = [8, 256], strides = [1, 1]} : vector<72x256xf32> to vector<8x256xf32>
    %c17_i32_19 = arith.constant 17 : i32
    %69 = tpu.dynamic_rotate %68 by %c17_i32_19 dim 1 : vector<8x256xf32>, i32 -> vector<8x256xf32>
    %70 = vector.extract_strided_slice %67 {offsets = [8, 0], sizes = [8, 256], strides = [1, 1]} : vector<72x256xf32> to vector<8x256xf32>
    %c16_i32_20 = arith.constant 16 : i32
    %71 = tpu.dynamic_rotate %70 by %c16_i32_20 dim 1 : vector<8x256xf32>, i32 -> vector<8x256xf32>
    %72 = arith.addf %69, %71 : vector<8x256xf32>
    %73 = vector.extract_strided_slice %67 {offsets = [16, 0], sizes = [8, 256], strides = [1, 1]} : vector<72x256xf32> to vector<8x256xf32>
    %c15_i32_21 = arith.constant 15 : i32
    %74 = tpu.dynamic_rotate %73 by %c15_i32_21 dim 1 : vector<8x256xf32>, i32 -> vector<8x256xf32>
    %75 = arith.addf %72, %74 : vector<8x256xf32>
    %76 = vector.extract_strided_slice %67 {offsets = [24, 0], sizes = [8, 256], strides = [1, 1]} : vector<72x256xf32> to vector<8x256xf32>
    %c1_i32_22 = arith.constant 1 : i32
    %77 = tpu.dynamic_rotate %76 by %c1_i32_22 dim 1 : vector<8x256xf32>, i32 -> vector<8x256xf32>
    %78 = arith.addf %75, %77 : vector<8x256xf32>
    %79 = vector.extract_strided_slice %67 {offsets = [32, 0], sizes = [8, 256], strides = [1, 1]} : vector<72x256xf32> to vector<8x256xf32>
    %80 = arith.addf %78, %79 : vector<8x256xf32>
    %81 = vector.extract_strided_slice %67 {offsets = [40, 0], sizes = [8, 256], strides = [1, 1]} : vector<72x256xf32> to vector<8x256xf32>
    %c255_i32_23 = arith.constant 255 : i32
    %82 = tpu.dynamic_rotate %81 by %c255_i32_23 dim 1 : vector<8x256xf32>, i32 -> vector<8x256xf32>
    %83 = arith.addf %80, %82 : vector<8x256xf32>
    %84 = vector.extract_strided_slice %67 {offsets = [48, 0], sizes = [8, 256], strides = [1, 1]} : vector<72x256xf32> to vector<8x256xf32>
    %c241_i32_24 = arith.constant 241 : i32
    %85 = tpu.dynamic_rotate %84 by %c241_i32_24 dim 1 : vector<8x256xf32>, i32 -> vector<8x256xf32>
    %86 = arith.addf %83, %85 : vector<8x256xf32>
    %87 = vector.extract_strided_slice %67 {offsets = [56, 0], sizes = [8, 256], strides = [1, 1]} : vector<72x256xf32> to vector<8x256xf32>
    %c240_i32_25 = arith.constant 240 : i32
    %88 = tpu.dynamic_rotate %87 by %c240_i32_25 dim 1 : vector<8x256xf32>, i32 -> vector<8x256xf32>
    %89 = arith.addf %86, %88 : vector<8x256xf32>
    %90 = vector.extract_strided_slice %67 {offsets = [64, 0], sizes = [8, 256], strides = [1, 1]} : vector<72x256xf32> to vector<8x256xf32>
    %c239_i32_26 = arith.constant 239 : i32
    %91 = tpu.dynamic_rotate %90 by %c239_i32_26 dim 1 : vector<8x256xf32>, i32 -> vector<8x256xf32>
    %92 = arith.addf %89, %91 : vector<8x256xf32>
    %c0_27 = arith.constant 0 : index
    %c0_28 = arith.constant 0 : index
    %93 = vector.load %arg7[%c0_27, %c0_28] : memref<8x256xf32, #tpu.memory_space<vmem>>, vector<8x256xf32>
    %c0_29 = arith.constant 0 : index
    %c0_30 = arith.constant 0 : index
    %94 = vector.load %arg8[%c0_29, %c0_30] : memref<8x256xf32, #tpu.memory_space<vmem>>, vector<8x256xf32>
    %95 = arith.mulf %92, %92 : vector<8x256xf32>
    %96 = tpu.concatenate %92, %95 in 0 : vector<8x256xf32>, vector<8x256xf32> -> vector<16x256xf32>
    %cst_31 = arith.constant dense<0.000000e+00> : vector<16xf32>
    %97 = vector.multi_reduction <add>, %96, %cst_31 [1] : vector<16x256xf32> to vector<16xf32>
    %98 = vector.shape_cast %97 : vector<16xf32> to vector<16x1xf32>
    %99 = vector.extract_strided_slice %98 {offsets = [0, 0], sizes = [8, 1], strides = [1, 1]} : vector<16x1xf32> to vector<8x1xf32>
    %cst_32 = arith.constant 3.906250e-03 : f32
    %100 = vector.broadcast %cst_32 : f32 to vector<8x1xf32>
    %101 = arith.mulf %99, %100 : vector<8x1xf32>
    %102 = vector.extract_strided_slice %98 {offsets = [8, 0], sizes = [8, 1], strides = [1, 1]} : vector<16x1xf32> to vector<8x1xf32>
    %cst_33 = arith.constant 3.906250e-03 : f32
    %103 = vector.broadcast %cst_33 : f32 to vector<8x1xf32>
    %104 = arith.mulf %102, %103 : vector<8x1xf32>
    %105 = arith.mulf %101, %101 : vector<8x1xf32>
    %106 = arith.subf %104, %105 : vector<8x1xf32>
    %cst_34 = arith.constant 0.000000e+00 : f32
    %107 = vector.broadcast %cst_34 : f32 to vector<8x1xf32>
    %108 = arith.maximumf %106, %107 : vector<8x1xf32>
    %109 = vector.broadcast %101 : vector<8x1xf32> to vector<8x256xf32>
    %110 = arith.subf %92, %109 : vector<8x256xf32>
    %cst_35 = arith.constant 9.99999974E-6 : f32
    %111 = vector.broadcast %cst_35 : f32 to vector<8x1xf32>
    %112 = arith.addf %108, %111 : vector<8x1xf32>
    %113 = math.rsqrt %112 : vector<8x1xf32>
    %114 = vector.broadcast %113 : vector<8x1xf32> to vector<8x256xf32>
    %115 = arith.mulf %110, %114 : vector<8x256xf32>
    %116 = arith.mulf %115, %93 : vector<8x256xf32>
    %117 = arith.addf %116, %94 : vector<8x256xf32>
    %118 = arith.addf %117, %64 : vector<8x256xf32>
    %cst_36 = arith.constant 0.000000e+00 : f32
    %119 = vector.broadcast %cst_36 : f32 to vector<8x256xf32>
    %120 = arith.maximumf %118, %119 : vector<8x256xf32>
    %c0_37 = arith.constant 0 : index
    %c0_38 = arith.constant 0 : index
    %c0_39 = arith.constant 0 : index
    %121 = vector.load %arg9[%c0_37, %c0_38, %c0_39] : memref<1x8x256xf32, #tpu.memory_space<vmem>>, vector<1x8x256xf32>
    %122 = vector.shape_cast %121 : vector<1x8x256xf32> to vector<8x256xf32>
    %123 = vector.shape_cast %120 : vector<8x256xf32> to vector<1x8x256xf32>
    tpu.vector_store %arg9[%c0_37, %c0_38, %c0_39], %123 {strides = array<i32>} : memref<1x8x256xf32, #tpu.memory_space<vmem>>, vector<1x8x256xf32>,
    return
  }
  func.func @transform_0(%arg0: i32) -> (i32, i32, i32) {
    %c0_i32 = arith.constant 0 : i32
    %c0_i32_0 = arith.constant 0 : i32
    %c0_i32_1 = arith.constant 0 : i32
    return %arg0, %c0_i32, %c0_i32_0 : i32, i32, i32
  }
  func.func @transform_1(%arg0: i32) -> (i32, i32) {
    %c0_i32 = arith.constant 0 : i32
    %c0_i32_0 = arith.constant 0 : i32
    %c0_i32_1 = arith.constant 0 : i32
    return %c0_i32, %c0_i32_0 : i32, i32
  }
  func.func @transform_2(%arg0: i32) -> (i32, i32) {
    %c0_i32 = arith.constant 0 : i32
    %c0_i32_0 = arith.constant 0 : i32
    %c0_i32_1 = arith.constant 0 : i32
    return %c0_i32, %c0_i32_0 : i32, i32
  }
  func.func @transform_3(%arg0: i32) -> (i32, i32) {
    %c0_i32 = arith.constant 0 : i32
    %c0_i32_0 = arith.constant 0 : i32
    %c0_i32_1 = arith.constant 0 : i32
    return %c0_i32, %c0_i32_0 : i32, i32
  }
  func.func @transform_4(%arg0: i32) -> (i32, i32) {
    %c0_i32 = arith.constant 0 : i32
    %c0_i32_0 = arith.constant 0 : i32
    %c0_i32_1 = arith.constant 0 : i32
    return %c0_i32, %c0_i32_0 : i32, i32
  }
  func.func @transform_5(%arg0: i32) -> (i32, i32) {
    %c0_i32 = arith.constant 0 : i32
    %c0_i32_0 = arith.constant 0 : i32
    %c0_i32_1 = arith.constant 0 : i32
    return %c0_i32, %c0_i32_0 : i32, i32
  }
  func.func @transform_6(%arg0: i32) -> (i32, i32) {
    %c0_i32 = arith.constant 0 : i32
    %c0_i32_0 = arith.constant 0 : i32
    %c0_i32_1 = arith.constant 0 : i32
    return %c0_i32, %c0_i32_0 : i32, i32
  }
  func.func @transform_7(%arg0: i32) -> (i32, i32) {
    %c0_i32 = arith.constant 0 : i32
    %c0_i32_0 = arith.constant 0 : i32
    %c0_i32_1 = arith.constant 0 : i32
    return %c0_i32, %c0_i32_0 : i32, i32
  }
  func.func @transform_8(%arg0: i32) -> (i32, i32, i32) {
    %c0_i32 = arith.constant 0 : i32
    %c0_i32_0 = arith.constant 0 : i32
    %c0_i32_1 = arith.constant 0 : i32
    return %arg0, %c0_i32, %c0_i32_0 : i32, i32, i32
  }
}

</mosaic_0001>

<bundles_post_ra>
// kernel: _lambda_.1
= control target key start
LH: loop header
LB: loop body
LE: loop exit
PB: predicated region body
PF: predicated region fallthrough
CT: control target
= control target key end

     0   :  { %13 = vsyncpa [#allocation3], 0  ;;  %s1846_s0 = inlined_call_operand.vmem [shape: f32[2,4,256], index: 0, kind: input, shape index: {}]   ;;  %s1847_s1 = inlined_call_operand.vmem [shape: f32[72,256], index: 1, kind: input, shape index: {}]   ;;  %s1848_s2 = inlined_call_operand.hbm [shape: bf16[80,4], index: 2, kind: input, shape index: {}]   ;;  %s1849_s3 = inlined_call_operand.hbm [shape: bf16[72,8], index: 3, kind: input, shape index: {}]   ;;  %s1850_s4 = inlined_call_operand.hbm [shape: f32[16,256], index: 4, kind: input, shape index: {}]   ;;  %s1851_s5 = inlined_call_operand.hbm [shape: f32[16,256], index: 5, kind: input, shape index: {}]   ;;  %s1852_s6 = inlined_call_operand.hbm [shape: f32[8,256], index: 6, kind: input, shape index: {}]   ;;  %s1853_s7 = inlined_call_operand.hbm [shape: f32[8,256], index: 7, kind: input, shape index: {}]   ;;  %s1854_s8 = inlined_call_operand.vmem [shape: f32[2,8,256], index: 8, kind: output, shape index: {}]  }
   0x1   :  { %14 = vsyncpa [#allocation5], 0 }
   0x2   :  { %15 = vsyncpa [#allocation8], 0 }
   0x3   :  { %16 = vsyncpa [#allocation11], 0  ;;  %s1462_s27 = smov 0  }
   0x4 LB: > { %s1468_s28 = sadd.s32 4294967295, %s1396_s27   ;;  %p1074_p0 = scmp.ge.s32.totalorder %s1396_s27, 1  ;;  %s1396_s27 = sphi %s1462_s27, %s22_s27  }
   0x5   : > { %p226_p1 = scmp.lt.s32.totalorder %s1396_s27, 3  ;;  %p1162_p2 = scmp.eq.s32.totalorder %s1468_s28, 0 }
   0x6   : > { %s1398_s30 = smov [#allocation4]   ;;  %s1399_s11 = smov [#allocation7]  }
   0x7   : > { %p1473_p3 = pnand %p1074_p0, %p226_p1  ;;  %s254_s9 = sshll.u32 %s1398_s30, 4  ;;  %s255_s9 = int_to_ptr.vmem [resolvable:$true] %s254_s9 }
   0x8   : > { %s280_s12 = sshll.u32 %s1399_s11, 4  ;;  %s1400_s13 = smov [#allocation2]   ;;  %s1485_s12 = int_to_ptr.vmem [resolvable:$true] %s280_s12 }
   0x9   : > { %p1143_p4 = pneg %p1473_p3  ;;  %s241_s14 = sshll.u32 %s1400_s13, 4  ;;  %s1487_s14 = int_to_ptr.vmem [resolvable:$true] %s241_s14 }
   0xa   : > { %s1229_s16 = scalar_lea.vmem %s255_s9, 576  ;;  %p1237_p10 = scmp.lt.s32.totalorder %s255_s9, %s255_s9 }
   0xb   : > { %p1481_p5 = pnand %p1162_p2, %p1143_p4  ;;  %p1230_p7 = scmp.ne.s32.totalorder %s255_s9, %s1229_s16 }
   0xc   : > { %p1238_p11 = scmp.lt.s32.totalorder %s1229_s16, %s1229_s16 }
   0xd   : > { %p1491_p6 = pneg %p1481_p5 }
   0xe   : > { %p1239_p12 = por %p1238_p11, %p1237_p10 }
   0xf   : > { %p1232_p8 = pnand %p1230_p7, %p1491_p6 }
  0x11   : > { %p1233_p9 = pneg %p1232_p8 }
  0x13   : > { %p1240_p13 = pnand %p1239_p12, %p1233_p9 }
  0x15   : > { %1243 = shalt.err (!%p1240_p13)
}
  0x16   : > { %s1401_s17 = smov 64   ;;  %s1402_s18 = smov 4  }
  0x17   : > { %1149 = dma.hbm_to_vmem [thread:$0]  (!%p1481_p5), %s1849_s3, 576, %s255_s9, [#allocation5], %s1401_s17, %s1401_s17, %s1402_s18  }
  0x18   : > { %s1255_s21 = scalar_lea.vmem %s1485_s12, 512  ;;  %p1263_p7 = scmp.lt.s32.totalorder %s1485_s12, %s1485_s12 }
  0x19   : > { %p1256_p0 = scmp.ne.s32.totalorder %s1485_s12, %s1255_s21  ;;  %p1264_p8 = scmp.lt.s32.totalorder %s1255_s21, %s1255_s21 }
  0x1b   : > { %p1258_p1 = pnand %p1256_p0, %p1491_p6  ;;  %p1265_p9 = por %p1264_p8, %p1263_p7 }
  0x1d   : > { %p1259_p4 = pneg %p1258_p1 }
  0x1f   : > { %p1266_p10 = pnand %p1265_p9, %p1259_p4 }
  0x21   : > { %1269 = shalt.err (!%p1266_p10)
}
  0x22   : > { %s1403_s22 = smov 256   ;;  %s1404_s23 = smov 16  }
  0x23   : > { %1155 = dma.hbm_to_vmem [thread:$0]  (!%p1481_p5), %s1851_s5, 512, %s1485_s12, [#allocation8], %s1403_s22, %s1403_s22, %s1404_s23  }
  0x24   : > { %s1281_s26 = scalar_lea.vmem %s1487_s14, 640  ;;  %p1289_p0 = scmp.lt.s32.totalorder %s1487_s14, %s1487_s14 }
  0x25   : > { %p1282_p11 = scmp.ne.s32.totalorder %s1487_s14, %s1281_s26  ;;  %p1290_p1 = scmp.lt.s32.totalorder %s1281_s26, %s1281_s26 }
  0x27   : > { %p1284_p12 = pnand %p1282_p11, %p1491_p6  ;;  %p1291_p4 = por %p1290_p1, %p1289_p0 }
  0x29   : > { %p1285_p13 = pneg %p1284_p12 }
  0x2b   : > { %p1292_p7 = pnand %p1291_p4, %p1285_p13 }
  0x2d   : > { %1295 = shalt.err (!%p1292_p7)
}
  0x2e   : > { %1146 = dma.hbm_to_vmem [thread:$0]  (!%p1481_p5), %s1848_s2, 640, %s1487_s14, [#allocation3], %s1401_s17, %s1401_s17, %s1402_s18  }
  0x2f   : > { %s1405_s11 = smov [#allocation6]   ;;  %s1406_s13 = smov [#allocation9]  }
  0x30   : > { %s267_s12 = sshll.u32 %s1405_s11, 4  ;;  %s294_s16 = sshll.u32 %s1406_s13, 4  ;;  %s268_s12 = int_to_ptr.vmem [resolvable:$true] %s267_s12  ;;  %s295_s16 = int_to_ptr.vmem [resolvable:$true] %s294_s16 }
  0x31   : > { %s1307_s19 = scalar_lea.vmem %s268_s12, 512  ;;  %p1315_p11 = scmp.lt.s32.totalorder %s268_s12, %s268_s12 }
  0x32   : > { %p1308_p8 = scmp.ne.s32.totalorder %s268_s12, %s1307_s19  ;;  %p1316_p12 = scmp.lt.s32.totalorder %s1307_s19, %s1307_s19 }
  0x34   : > { %p1310_p9 = pnand %p1308_p8, %p1491_p6  ;;  %p1317_p13 = por %p1316_p12, %p1315_p11 }
  0x36   : > { %p1311_p10 = pneg %p1310_p9 }
  0x38   : > { %p1318_p0 = pnand %p1317_p13, %p1311_p10 }
  0x3a   : > { %1321 = shalt.err (!%p1318_p0)
}
  0x3b   : > { %1152 = dma.hbm_to_vmem [thread:$0]  (!%p1481_p5), %s1850_s4, 512, %s268_s12, [#allocation5], %s1403_s22, %s1403_s22, %s1404_s23  }
  0x3c   : > { %s1333_s18 = scalar_lea.vmem %s295_s16, 256  ;;  %p1341_p8 = scmp.lt.s32.totalorder %s295_s16, %s295_s16 }
  0x3d   : > { %p1334_p1 = scmp.ne.s32.totalorder %s295_s16, %s1333_s18  ;;  %p1342_p9 = scmp.lt.s32.totalorder %s1333_s18, %s1333_s18 }
  0x3f   : > { %p1336_p4 = pnand %p1334_p1, %p1491_p6  ;;  %p1343_p11 = por %p1342_p9, %p1341_p8 }
  0x41   : > { %p1337_p7 = pneg %p1336_p4 }
  0x43   : > { %p1344_p10 = pnand %p1343_p11, %p1337_p7 }
  0x45   : > { %1347 = shalt.err (!%p1344_p10)
}
  0x46   : > { %1158 = dma.hbm_to_vmem [thread:$0]  (!%p1481_p5), %s1852_s6, 256, %s295_s16, [#allocation8]  }
  0x47   : > { %s1407_s24 = smov [#allocation10]  }
  0x48   : > { %s305_s25 = sshll.u32 %s1407_s24, 4  ;;  %s306_s25 = int_to_ptr.vmem [resolvable:$true] %s305_s25 }
  0x49   : > { %s1359_s22 = scalar_lea.vmem %s306_s25, 256  ;;  %p1367_p1 = scmp.lt.s32.totalorder %s306_s25, %s306_s25 }
  0x4a   : > { %p1360_p12 = scmp.ne.s32.totalorder %s306_s25, %s1359_s22  ;;  %p1368_p4 = scmp.lt.s32.totalorder %s1359_s22, %s1359_s22 }
  0x4c   : > { %p1362_p13 = pnand %p1360_p12, %p1491_p6  ;;  %p1369_p8 = por %p1368_p4, %p1367_p1 }
  0x4e   : > { %p1363_p0 = pneg %p1362_p13 }
  0x50   : > { %p1370_p7 = pnand %p1369_p8, %p1363_p0 }
  0x52   : > { %1373 = shalt.err (!%p1370_p7)
}
  0x53   : > { %1161 = dma.hbm_to_vmem [thread:$0]  (!%p1481_p5), %s1853_s7, 256, %s306_s25, [#allocation11]  }
  0x54   : > { %326 = sbr.rel (%p1473_p3) target bundleno = 1157 (0x485), region = 52 }
  0x59   : > { %1379 = dma.done.wait (%p1162_p2), [#allocation3], 640  }
  0x5a   : > { %1381 = vsyncadd (%p1162_p2), [#allocation3], 4294966656 }
  0x5b   : > { %1383 = dma.done.wait (%p1162_p2), [#allocation5], 1088  }
  0x5c   : > { %1385 = vsyncadd (%p1162_p2), [#allocation5], 4294966208 }
  0x5d   : > { %1387 = dma.done.wait (%p1162_p2), [#allocation8], 768  }
  0x5e   : > { %1389 = vsyncadd (%p1162_p2), [#allocation8], 4294966528 }
  0x5f   : > { %1391 = dma.done.wait (%p1162_p2), [#allocation11], 256  }
  0x60   : > { %1393 = vsyncadd (%p1162_p2), [#allocation11], 4294967040  ;;  %p380_p3 = scmp.lt.s32.totalorder %s1468_s28, 1  ;;  %v1408_v0 = vmov 0   ;;  %vm475_vm0 = vcmask 1041408   ;;  %v1202_v6 = vld [vmem:[#allocation2] sm:$0xff]  }
  0x61   : > { %514 = vmatprep.mubr.bf16.mxu0 %v1408_v0  ;;  %793 = vmatprep.mubr.bf16.mxu1 %v1408_v0  ;;  %vm459_vm1 = vcmask 31744   ;;  %v1203_v7 = vld [vmem:[#allocation2 + $0x8] sm:$0xff]   ;;  %v1204_v8 = vld [vmem:[#allocation2 + $0x10] sm:$0xff]   ;;  %v1205_v9 = vld [vmem:[#allocation2 + $0x18] sm:$0xff]   ;;  %s1409_s14 = smov 17   ;;  %s1410_s24 = smov 16  }
  0x62   : > { %s1859_s28 = smov (!%p380_p3, %s1468_s28), 1  ;;  %v1206_v10 = vld [vmem:[#allocation2 + $0x20] sm:$0xff]   ;;  %v1594_v14 = vld [vmem:[%s1847_s1 + $0x8] sm:$0xff]  ;;  %v1599_v16 = vld [vmem:[%s1847_s1 + $0x10] sm:$0xff]  ;;  %s1413_s17 = smov 127   ;;  %vm754_vm10 = vcmask 1043456  }
  0x63   : > { %s1117_s29 = sshll.u32 %s1859_s28, 3  ;;  %v1588_v11 = vld [vmem:[%s1847_s1] sm:$0xff]  ;;  %v1607_v20 = vld [vmem:[%s1847_s1 + $0x18] sm:$0xff]  ;;  %v1621_v26 = vld [vmem:[%s1847_s1 + $0x28] sm:$0xff]  ;;  %s1414_s22 = smov 113   ;;  %vm738_vm11 = vcmask 64512  }
  0x64   : > { %s384_s30 = scalar_lea.vmem %s1846_s0, %s1117_s29  ;;  %v1612_v22 = vld [vmem:[%s1847_s1 + $0x20] sm:$0xff]  ;;  %v1626_v28 = vld [vmem:[%s1847_s1 + $0x30] sm:$0xff]  ;;  %s1411_s29 = smov 15   ;;  %v1635_v32 = vld [vmem:[%s1847_s1 + $0x38] sm:$0xff] }
  0x65   : > { %v428_v1 = vld [vmem:[%s384_s30] sm:$0xff]  ;;  %s1412_s30 = smov 1   ;;  %v1647_v37 = vld [vmem:[%s1847_s1 + $0x50] sm:$0xff]  ;;  %v1653_v39 = vld [vmem:[%s1847_s1 + $0x58] sm:$0xff]  ;;  %s1415_s9 = smov 112  }
  0x66   : > { %v430_v2 = vcombine.high %v428_v1, %v428_v1  ;;  %v432_v3 = vpack.c.bf16 %v428_v1, %v428_v1  ;;  %v1659_v42 = vld [vmem:[%s1847_s1 + $0x60] sm:$0xff]  ;;  %v1666_v45 = vld [vmem:[%s1847_s1 + $0x68] sm:$0xff]  ;;  %v1673_v48 = vld [vmem:[%s1847_s1 + $0x70] sm:$0xff]  ;;  %s1416_s13 = smov 111   ;;  %v587_v1 = vlaneseq }
  0x67   : > { %v1680_v51 = vld [vmem:[%s1847_s1 + $0x78] sm:$0xff]  ;;  %v1687_v54 = vld [vmem:[%s1847_s1 + $0x80] sm:$0xff]  ;;  %v1694_v57 = vld [vmem:[%s1847_s1 + $0x88] sm:$0xff] }
  0x68   : > { %v433_v4 = vpack.c.bf16 %v430_v2, %v430_v2  ;;  %v477_v5 = vsel %vm475_vm0, %v432_v3, 0 }
  0x6a   : > { %1098 = vmatprep.subr.msk.bf16.mxu0 %vm475_vm0, %v433_v4  ;;  %v1701_v4 = vand.u32 127, %v587_v1 }
  0x6b   : > { %497 = vmatpush1.bf16.msra.mxu0 %v477_v5 }
  0x6c   : > { %vm596_vm2 = vcmp.lt.s32.totalorder %v1701_v4, 16  ;;  %vm589_vm3 = vcmp.lt.s32.totalorder %v1701_v4, 17  ;;  %vm605_vm4 = vcmp.lt.s32.totalorder %v1701_v4, 15  ;;  %vm614_vm5 = vcmp.lt.s32.totalorder %v1701_v4, 1 }
  0x6d   : > { %vm625_vm6 = vcmp.lt.s32.totalorder %v1701_v4, 127  ;;  %vm634_vm7 = vcmp.lt.s32.totalorder %v1701_v4, 113  ;;  %vm643_vm8 = vcmp.lt.s32.totalorder %v1701_v4, 112  ;;  %vm652_vm9 = vcmp.lt.s32.totalorder %v1701_v4, 111 }
  0x6e   : > { %1099 = vmatmul.mubr.msk.bf16.vlgmr.msra.gmra.mxu0 %vm459_vm1, %v1202_v6 }
  0x6f   : > { %524 = vmatprep.mubr.bf16.mxu0 %v1408_v0 }
  0x76   : > { %1100 = vmatmul.mubr.msk.bf16.gmra.mxu0 %vm459_vm1, %v1203_v7 }
  0x77   : > { %534 = vmatprep.mubr.bf16.mxu0 %v1408_v0 }
  0x7e   : > { %1101 = vmatmul.mubr.msk.bf16.gmra.mxu0 %vm459_vm1, %v1204_v8 }
  0x7f   : > { %544 = vmatprep.mubr.bf16.mxu0 %v1408_v0 }
  0x86   : > { %1102 = vmatmul.mubr.msk.bf16.gmra.mxu0 %vm459_vm1, %v1205_v9 }
  0x87   : > { %554 = vmatprep.mubr.bf16.mxu0 %v1408_v0 }
  0x8e   : > { %1103 = vmatmul.mubr.msk.bf16.gmra.mxu0 %vm459_vm1, %v1206_v10 }
 0x12e   : > { %v516_v12 = vpop.f32.mrf.mxu0 }
 0x12f   : > { %v565_v13 = vmul.f32 %v516_v12, %v1588_v11 }
 0x130   : > { %v518_v15 = vpop.f32.mrf.mxu0 }
 0x131   : > { %583 = vrot.lane.b32.xlu0 %v565_v13, %s1409_s14  ;;  %v566_v18 = vmul.f32 %v518_v15, %v1594_v14 }
 0x132   : > { %v520_v17 = vpop.f32.mrf.mxu0 }
 0x133   : > { %v567_v19 = vmul.f32 %v520_v17, %v1599_v16 }
 0x134   : > { %v522_v21 = vpop.f32.mrf.mxu0 }
 0x135   : > { %592 = vrot.lane.b32.xlu1 %v567_v19, %s1410_s24  ;;  %585 = vrot.lane.b32.xlu0 %v566_v18, %s1409_s14  ;;  %v568_v24 = vmul.f32 %v522_v21, %v1607_v20 }
 0x136   : > { %v526_v23 = vpop.f32.mrf.mxu0 }
 0x137   : > { %v569_v25 = vmul.f32 %v526_v23, %v1612_v22 }
 0x138   : > { %v528_v27 = vpop.f32.mrf.mxu0 }
 0x139   : > { %594 = vrot.lane.b32.xlu1 %v568_v24, %s1410_s24  ;;  %601 = vrot.lane.b32.xlu0 %v569_v25, %s1411_s29  ;;  %v570_v30 = vmul.f32 %v528_v27, %v1621_v26 }
 0x13a   : > { %v530_v29 = vpop.f32.mrf.mxu0 }
 0x13b   : > { %v571_v31 = vmul.f32 %v530_v29, %v1626_v28  ;;  %v1726_v29 = vld [vmem:[%s1847_s1 + $0x40] sm:$0xff] }
 0x13c   : > { %v532_v33 = vpop.f32.mrf.mxu0 }
 0x13d   : > { %603 = vrot.lane.b32.xlu1 %v570_v30, %s1411_s29  ;;  %610 = vrot.lane.b32.xlu0 %v571_v31, %s1412_s30  ;;  %v572_v35 = vmul.f32 %v532_v33, %v1635_v32  ;;  %v1731_v30 = vld [vmem:[%s1847_s1 + $0x48] sm:$0xff] }
 0x13e   : > { %v1639_v34 = vpop.f32.mrf.mxu0 }
 0x140   : > { %v1642_v36 = vpop.f32.mrf.mxu0 }
 0x141   : > { %612 = vrot.lane.b32.xlu1 %v572_v35, %s1412_s30 }
 0x142   : > { %v540_v38 = vpop.f32.mrf.mxu0 }
 0x143   : > { %v575_v40 = vmul.f32 %v540_v38, %v1647_v37  ;;  %v573_v38 = vmul.f32 %v1639_v34, %v1726_v29 }
 0x144   : > { %v542_v41 = vpop.f32.mrf.mxu0 }
 0x145   : > { %v576_v43 = vmul.f32 %v542_v41, %v1653_v39  ;;  %621 = vrot.lane.b32.xlu0 %v575_v40, %s1413_s17  ;;  %v574_v40 = vmul.f32 %v1642_v36, %v1731_v30 }
 0x146   : > { %v546_v44 = vpop.f32.mrf.mxu0 }
 0x147   : > { %v577_v46 = vmul.f32 %v546_v44, %v1659_v42  ;;  %623 = vrot.lane.b32.xlu1 %v576_v43, %s1413_s17 }
 0x148   : > { %v548_v47 = vpop.f32.mrf.mxu0 }
 0x149   : > { %v578_v49 = vmul.f32 %v548_v47, %v1666_v45  ;;  %630 = vrot.lane.b32.xlu0 %v577_v46, %s1414_s22 }
 0x14a   : > { %v550_v50 = vpop.f32.mrf.mxu0 }
 0x14b   : > { %v579_v52 = vmul.f32 %v550_v50, %v1673_v48  ;;  %632 = vrot.lane.b32.xlu1 %v578_v49, %s1414_s22 }
 0x14c   : > { %v552_v53 = vpop.f32.mrf.mxu0 }
 0x14d   : > { %v580_v55 = vmul.f32 %v552_v53, %v1680_v51  ;;  %639 = vrot.lane.b32.xlu0 %v579_v52, %s1415_s9 }
 0x14e   : > { %v556_v56 = vpop.f32.mrf.mxu0 }
 0x14f   : > { %v581_v58 = vmul.f32 %v556_v56, %v1687_v54  ;;  %641 = vrot.lane.b32.xlu1 %v580_v55, %s1415_s9 }
 0x150   : > { %v558_v59 = vpop.f32.mrf.mxu0 }
 0x151   : > { %v582_v60 = vmul.f32 %v558_v59, %v1694_v57  ;;  %648 = vrot.lane.b32.xlu0 %v581_v58, %s1416_s13 }
 0x153   : > { %650 = vrot.lane.b32.xlu1 %v582_v60, %s1416_s13 }
 0x1a3   : > { %v584_v61 = vpop.permute.xlu0 %583 }
 0x1a7   : > { %v593_v62 = vpop.permute.xlu1 %592  ;;  %v586_v63 = vpop.permute.xlu0 %585 }
 0x1a8   : > { %v590_v10 = vsel %vm589_vm3, %v584_v61, %v586_v63  ;;  %v591_v12 = vsel %vm589_vm3, %v586_v63, %v584_v61 }
 0x1ab   : > { %v595_v2 = vpop.permute.xlu1 %594  ;;  %v602_v3 = vpop.permute.xlu0 %601 }
 0x1ac   : > { %v597_v7 = vsel %vm596_vm2, %v593_v62, %v595_v2  ;;  %v598_v8 = vsel %vm596_vm2, %v595_v2, %v593_v62 }
 0x1ad   : > { %v599_v17 = vadd.f32 %v598_v8, %v591_v12  ;;  %v600_v18 = vadd.f32 %v597_v7, %v590_v10 }
 0x1af   : > { %v604_v5 = vpop.permute.xlu1 %603  ;;  %v611_v6 = vpop.permute.xlu0 %610 }
 0x1b0   : > { %v606_v13 = vsel %vm605_vm4, %v602_v3, %v604_v5  ;;  %v607_v15 = vsel %vm605_vm4, %v604_v5, %v602_v3 }
 0x1b1   : > { %v608_v24 = vadd.f32 %v607_v15, %v599_v17  ;;  %v609_v25 = vadd.f32 %v606_v13, %v600_v18 }
 0x1b3   : > { %v613_v9 = vpop.permute.xlu1 %612 }
 0x1b4   : > { %v615_v21 = vsel %vm614_vm5, %v611_v6, %v613_v9  ;;  %v616_v23 = vsel %vm614_vm5, %v613_v9, %v611_v6 }
 0x1b5   : > { %v617_v31 = vadd.f32 %v616_v23, %v608_v24  ;;  %v618_v33 = vadd.f32 %v615_v21, %v609_v25 }
 0x1b7   : > { %v622_v19 = vpop.permute.xlu0 %621  ;;  %v619_v46 = vadd.f32 %v617_v31, %v573_v38  ;;  %v620_v47 = vadd.f32 %v618_v33, %v574_v40  ;;  %v657_v31 = vld [vmem:[#allocation6] sm:$0xff]  ;;  %v662_v38 = vld [vmem:[#allocation7 + $0x8] sm:$0xff] }
 0x1b8   : > { %v661_v40 = vld [vmem:[#allocation7] sm:$0xff] }
 0x1b9   : > { %v624_v27 = vpop.permute.xlu1 %623 }
 0x1ba   : > { %v626_v43 = vsel %vm625_vm6, %v622_v19, %v624_v27  ;;  %v627_v44 = vsel %vm625_vm6, %v624_v27, %v622_v19  ;;  %v658_v27 = vld [vmem:[#allocation6 + $0x8] sm:$0xff] }
 0x1bb   : > { %v631_v35 = vpop.permute.xlu0 %630  ;;  %v628_v50 = vadd.f32 %v626_v43, %v619_v46  ;;  %v629_v52 = vadd.f32 %v627_v44, %v620_v47 }
 0x1bd   : > { %v633_v41 = vpop.permute.xlu1 %632 }
 0x1be   : > { %v635_v34 = vsel %vm634_vm7, %v631_v35, %v633_v41  ;;  %v636_v36 = vsel %vm634_vm7, %v633_v41, %v631_v35 }
 0x1bf   : > { %v640_v49 = vpop.permute.xlu0 %639  ;;  %v637_v58 = vadd.f32 %v635_v34, %v628_v50  ;;  %v638_v59 = vadd.f32 %v636_v36, %v629_v52  ;;  %v1207_v52 = vld [vmem:[#allocation4] sm:$0xff]  }
 0x1c1   : > { %v642_v53 = vpop.permute.xlu1 %641 }
 0x1c2   : > { %v644_v55 = vsel %vm643_vm8, %v640_v49, %v642_v53  ;;  %v645_v56 = vsel %vm643_vm8, %v642_v53, %v640_v49  ;;  %v1208_v53 = vld [vmem:[#allocation4 + $0x8] sm:$0xff]  }
 0x1c3   : > { %v646_v60 = vadd.f32 %v644_v55, %v637_v58  ;;  %v647_v61 = vadd.f32 %v645_v56, %v638_v59  ;;  %v649_v62 = vpop.permute.xlu0 %648  ;;  %v1209_v55 = vld [vmem:[#allocation4 + $0x10] sm:$0xff]   ;;  %v1210_v56 = vld [vmem:[#allocation4 + $0x18] sm:$0xff]   ;;  %v1211_v58 = vld [vmem:[#allocation4 + $0x20] ss:$0 sps:$4 sm:$0xff]  }
 0x1c5   : > { %v651_v63 = vpop.permute.xlu1 %650 }
 0x1c6   : > { %v653_v1 = vsel %vm652_vm9, %v649_v62, %v651_v63  ;;  %v654_v2 = vsel %vm652_vm9, %v651_v63, %v649_v62 }
 0x1c7   : > { %v655_v3 = vadd.f32 %v653_v1, %v646_v60  ;;  %v656_v5 = vadd.f32 %v654_v2, %v647_v61 }
 0x1c9   : > { %v669_v6 = vadd.f32 %v656_v5, %v655_v3  ;;  %v665_v7 = vmul.f32 %v655_v3, %v655_v3  ;;  %v666_v8 = vmul.f32 %v656_v5, %v656_v5 }
 0x1cb   : > { %670 = vadd.xlane.f32.xlu0 %v669_v6  ;;  %v675_v9 = vadd.f32 %v666_v8, %v665_v7 }
 0x1cd   : > { %676 = vadd.xlane.f32.xlu1 %v675_v9 }
 0x254   : > { %v671_v10 = vpop.xlane.xlu0 %670 }
 0x255   : > { %v681_v12 = vmul.f32 0.00390625, %v671_v10 }
 0x256   : > { %v677_v13 = vpop.xlane.xlu1 %676 }
 0x257   : > { %v685_v15 = vmul.f32 %v681_v12, %v681_v12  ;;  %v683_v17 = vmul.f32 0.00390625, %v677_v13  ;;  %v691_v23 = vsub.f32 %v655_v3, %v681_v12  ;;  %v692_v24 = vsub.f32 %v656_v5, %v681_v12 }
 0x259   : > { %v687_v18 = vsub.f32 %v683_v17, %v685_v15 }
 0x25b   : > { %v689_v19 = vmax.f32 %v687_v18, 0.0 }
 0x25d   : > { %v695_v21 = vadd.f32 1e-05, %v689_v19 }
 0x25f   : > { %1212 = vrsqrt.f32 %v695_v21 }
 0x26c   : > { %v1213_v25 = vpop.eup %1212 }
 0x26d   : > { %v700_v33 = vmul.f32 %v1213_v25, %v692_v24  ;;  %v699_v35 = vmul.f32 %v1213_v25, %v691_v23  ;;  %v1793_v24 = vpop.f32.mrf.mxu0 }
 0x26f   : > { %v704_v41 = vmul.f32 %v700_v33, %v658_v27  ;;  %v703_v43 = vmul.f32 %v699_v35, %v657_v31  ;;  %v1795_v25 = vpop.f32.mrf.mxu0 }
 0x271   : > { %v708_v44 = vadd.f32 %v704_v41, %v662_v38  ;;  %v707_v46 = vadd.f32 %v703_v43, %v661_v40 }
 0x273   : > { %v712_v47 = vmax.f32 %v708_v44, 0.0  ;;  %v711_v49 = vmax.f32 %v707_v46, 0.0 }
 0x275   : > { %v714_v34 = vpack.c.bf16 %v712_v47, %v712_v47  ;;  %v713_v36 = vpack.c.bf16 %v711_v49, %v711_v49 }
 0x277   : > { %1109 = vmatprep.subr.msk.bf16.mxu1 %vm754_vm10, %v714_v34  ;;  %v756_v50 = vsel %vm754_vm10, %v713_v36, 0 }
 0x278   : > { %776 = vmatpush1.bf16.msra.mxu1 %v756_v50 }
 0x27b   : > { %1110 = vmatmul.mubr.msk.bf16.vlgmr.msra.gmra.mxu1 %vm738_vm11, %v1207_v52 }
 0x27c   : > { %803 = vmatprep.mubr.bf16.mxu1 %v1408_v0 }
 0x283   : > { %1111 = vmatmul.mubr.msk.bf16.gmra.mxu1 %vm738_vm11, %v1208_v53 }
 0x284   : > { %813 = vmatprep.mubr.bf16.mxu1 %v1408_v0 }
 0x28b   : > { %1112 = vmatmul.mubr.msk.bf16.gmra.mxu1 %vm738_vm11, %v1209_v55 }
 0x28c   : > { %823 = vmatprep.mubr.bf16.mxu1 %v1408_v0 }
 0x293   : > { %1113 = vmatmul.mubr.msk.bf16.gmra.mxu1 %vm738_vm11, %v1210_v56 }
 0x294   : > { %833 = vmatprep.mubr.bf16.mxu1 %v1408_v0 }
 0x29b   : > { %1114 = vmatmul.mubr.msk.bf16.gmra.mxu1 %vm738_vm11, %v1211_v58 }
 0x33b   : > { %v795_v59 = vpop.f32.mrf.mxu1 }
 0x33c   : > { %v842_v60 = vmul.f32 %v795_v59, %v1588_v11 }
 0x33d   : > { %v797_v61 = vpop.f32.mrf.mxu1 }
 0x33e   : > { %v843_v62 = vmul.f32 %v797_v61, %v1594_v14  ;;  %860 = vrot.lane.b32.xlu0 %v842_v60, %s1409_s14 }
 0x33f   : > { %v799_v63 = vpop.f32.mrf.mxu1 }
 0x340   : > { %v844_v1 = vmul.f32 %v799_v63, %v1599_v16  ;;  %862 = vrot.lane.b32.xlu1 %v843_v62, %s1409_s14  ;;  %s1118_s14 = sshll.u32 %s1859_s28, 4 }
 0x341   : > { %v801_v2 = vpop.f32.mrf.mxu1 }
 0x342   : > { %v845_v3 = vmul.f32 %v801_v2, %v1607_v20  ;;  %866 = vrot.lane.b32.xlu0 %v844_v1, %s1410_s24 }
 0x343   : > { %v805_v0 = vpop.f32.mrf.mxu1 }
 0x344   : > { %v846_v5 = vmul.f32 %v805_v0, %v1612_v22  ;;  %868 = vrot.lane.b32.xlu1 %v845_v3, %s1410_s24 }
 0x345   : > { %v807_v11 = vpop.f32.mrf.mxu1 }
 0x346   : > { %v847_v14 = vmul.f32 %v807_v11, %v1621_v26  ;;  %874 = vrot.lane.b32.xlu0 %v846_v5, %s1411_s29 }
 0x347   : > { %v809_v6 = vpop.f32.mrf.mxu1 }
 0x348   : > { %v848_v16 = vmul.f32 %v809_v6, %v1626_v28  ;;  %876 = vrot.lane.b32.xlu1 %v847_v14, %s1411_s29 }
 0x349   : > { %v811_v7 = vpop.f32.mrf.mxu1 }
 0x34a   : > { %v849_v20 = vmul.f32 %v811_v7, %v1635_v32  ;;  %882 = vrot.lane.b32.xlu0 %v848_v16, %s1412_s30 }
 0x34b   : > { %v815_v8 = vpop.f32.mrf.mxu1 }
 0x34c   : > { %884 = vrot.lane.b32.xlu1 %v849_v20, %s1412_s30  ;;  %v850_v2 = vmul.f32 %v815_v8, %v1726_v29  ;;  %s389_s30 = scalar_lea.vmem %s1854_s8, %s1118_s14 }
 0x34d   : > { %v817_v22 = vpop.f32.mrf.mxu1 }
 0x34e   : > { %v851_v3 = vmul.f32 %v817_v22, %v1731_v30 }
 0x34f   : > { %v819_v9 = vpop.f32.mrf.mxu1 }
 0x350   : > { %v852_v10 = vmul.f32 %v819_v9, %v1647_v37 }
 0x351   : > { %v821_v26 = vpop.f32.mrf.mxu1 }
 0x352   : > { %v853_v12 = vmul.f32 %v821_v26, %v1653_v39  ;;  %892 = vrot.lane.b32.xlu0 %v852_v10, %s1413_s17 }
 0x353   : > { %v825_v28 = vpop.f32.mrf.mxu1 }
 0x354   : > { %v854_v13 = vmul.f32 %v825_v28, %v1659_v42  ;;  %894 = vrot.lane.b32.xlu1 %v853_v12, %s1413_s17 }
 0x355   : > { %v827_v32 = vpop.f32.mrf.mxu1 }
 0x356   : > { %v855_v15 = vmul.f32 %v827_v32, %v1666_v45  ;;  %900 = vrot.lane.b32.xlu0 %v854_v13, %s1414_s22 }
 0x357   : > { %v829_v17 = vpop.f32.mrf.mxu1 }
 0x358   : > { %v856_v18 = vmul.f32 %v829_v17, %v1673_v48  ;;  %902 = vrot.lane.b32.xlu1 %v855_v15, %s1414_s22 }
 0x359   : > { %v831_v37 = vpop.f32.mrf.mxu1 }
 0x35a   : > { %v857_v39 = vmul.f32 %v831_v37, %v1680_v51  ;;  %908 = vrot.lane.b32.xlu0 %v856_v18, %s1415_s9  ;;  %v668_v51 = vmul.f32 %v1795_v25, %v1795_v25 }
 0x35b   : > { %v835_v19 = vpop.f32.mrf.mxu1 }
 0x35c   : > { %v858_v42 = vmul.f32 %v835_v19, %v1687_v54  ;;  %910 = vrot.lane.b32.xlu1 %v857_v39, %s1415_s9  ;;  %v672_v54 = vadd.f32 %v1795_v25, %v1793_v24 }
 0x35d   : > { %v837_v21 = vpop.f32.mrf.mxu1 }
 0x35e   : > { %v859_v45 = vmul.f32 %v837_v21, %v1694_v57  ;;  %916 = vrot.lane.b32.xlu0 %v858_v42, %s1416_s13  ;;  %v667_v57 = vmul.f32 %v1793_v24, %v1793_v24 }
 0x35f   : > { %v839_v23 = vpop.f32.mrf.mxu1 }
 0x360   : > { %918 = vrot.lane.b32.xlu1 %v859_v45, %s1416_s13  ;;  %v678_v27 = vadd.f32 %v668_v51, %v667_v57 }
 0x361   : > { %v840_v48 = vpop.f32.mrf.mxu1 }
 0x37d   : > { %673 = vadd.xlane.f32.xlu0 %v672_v54 }
 0x381   : > { %679 = vadd.xlane.f32.xlu0 %v678_v27 }
 0x3b0   : > { %v861_v31 = vpop.permute.xlu0 %860 }
 0x3b2   : > { %v863_v33 = vpop.permute.xlu1 %862 }
 0x3b3   : > { %v864_v49 = vsel %vm589_vm3, %v861_v31, %v863_v33  ;;  %v865_v34 = vsel %vm589_vm3, %v863_v33, %v861_v31 }
 0x3b4   : > { %v867_v35 = vpop.permute.xlu0 %866 }
 0x3b6   : > { %v869_v38 = vpop.permute.xlu1 %868 }
 0x3b7   : > { %v870_v44 = vsel %vm596_vm2, %v867_v35, %v869_v38  ;;  %v871_v46 = vsel %vm596_vm2, %v869_v38, %v867_v35 }
 0x3b8   : > { %v875_v40 = vpop.permute.xlu0 %874  ;;  %v872_v52 = vadd.f32 %v871_v46, %v865_v34  ;;  %v873_v53 = vadd.f32 %v870_v44, %v864_v49 }
 0x3ba   : > { %v877_v41 = vpop.permute.xlu1 %876 }
 0x3bb   : > { %v878_v36 = vsel %vm605_vm4, %v875_v40, %v877_v41  ;;  %v879_v50 = vsel %vm605_vm4, %v877_v41, %v875_v40 }
 0x3bc   : > { %v883_v43 = vpop.permute.xlu0 %882  ;;  %v880_v59 = vadd.f32 %v879_v50, %v872_v52  ;;  %v881_v60 = vadd.f32 %v878_v36, %v873_v53  ;;  %v659_v50 = vld [vmem:[#allocation6 + $0x10] sm:$0xff]  ;;  %v660_v52 = vld [vmem:[#allocation6 + $0x18] sm:$0xff] }
 0x3be   : > { %v885_v47 = vpop.permute.xlu1 %884 }
 0x3bf   : > { %v886_v56 = vsel %vm614_vm5, %v883_v43, %v885_v47  ;;  %v887_v58 = vsel %vm614_vm5, %v885_v47, %v883_v43 }
 0x3c0   : > { %v888_v62 = vadd.f32 %v887_v58, %v880_v59  ;;  %v889_v63 = vadd.f32 %v886_v56, %v881_v60  ;;  %v924_v58 = vld [vmem:[#allocation9] sm:$0xff]  ;;  %v925_v59 = vld [vmem:[#allocation9 + $0x8] sm:$0xff]  ;;  %v663_v60 = vld [vmem:[#allocation7 + $0x10] sm:$0xff] }
 0x3c2   : > { %v890_v14 = vadd.f32 %v888_v62, %v850_v2  ;;  %v891_v6 = vadd.f32 %v889_v63, %v851_v3  ;;  %v664_v2 = vld [vmem:[#allocation7 + $0x18] sm:$0xff]  ;;  %v926_v3 = vld [vmem:[#allocation10] sm:$0xff] }
 0x3c4   : > { %v893_v55 = vpop.permute.xlu0 %892 }
 0x3c6   : > { %v895_v61 = vpop.permute.xlu1 %894 }
 0x3c7   : > { %v896_v5 = vsel %vm625_vm6, %v893_v55, %v895_v61  ;;  %v897_v11 = vsel %vm625_vm6, %v895_v61, %v893_v55 }
 0x3c8   : > { %v901_v1 = vpop.permute.xlu0 %900  ;;  %v898_v9 = vadd.f32 %v896_v5, %v890_v14  ;;  %v899_v29 = vadd.f32 %v897_v11, %v891_v6 }
 0x3ca   : > { %v903_v0 = vpop.permute.xlu1 %902 }
 0x3cb   : > { %v904_v7 = vsel %vm634_vm7, %v901_v1, %v903_v0  ;;  %v905_v20 = vsel %vm634_vm7, %v903_v0, %v901_v1 }
 0x3cc   : > { %v909_v16 = vpop.permute.xlu0 %908  ;;  %v906_v10 = vadd.f32 %v904_v7, %v898_v9  ;;  %v907_v26 = vadd.f32 %v905_v20, %v899_v29 }
 0x3ce   : > { %v911_v8 = vpop.permute.xlu1 %910 }
 0x3cf   : > { %v912_v30 = vsel %vm643_vm8, %v909_v16, %v911_v8  ;;  %v913_v22 = vsel %vm643_vm8, %v911_v8, %v909_v16 }
 0x3d0   : > { %v914_v12 = vadd.f32 %v912_v30, %v906_v10  ;;  %v915_v28 = vadd.f32 %v913_v22, %v907_v26  ;;  %v917_v13 = vpop.permute.xlu0 %916 }
 0x3d2   : > { %v919_v32 = vpop.permute.xlu1 %918 }
 0x3d3   : > { %v920_v15 = vsel %vm652_vm9, %v917_v13, %v919_v32  ;;  %v921_v17 = vsel %vm652_vm9, %v919_v32, %v917_v13 }
 0x3d4   : > { %v922_v18 = vadd.f32 %v920_v15, %v914_v12  ;;  %v923_v37 = vadd.f32 %v921_v17, %v915_v28 }
 0x3d6   : > { %v930_v39 = vadd.f32 %v923_v37, %v922_v18  ;;  %v928_v19 = vmul.f32 %v922_v18, %v922_v18  ;;  %v929_v42 = vmul.f32 %v923_v37, %v923_v37 }
 0x3d8   : > { %931 = vadd.xlane.f32.xlu1 %v930_v39  ;;  %v933_v21 = vadd.f32 %v929_v42, %v928_v19 }
 0x3da   : > { %934 = vadd.xlane.f32.xlu0 %v933_v21 }
 0x406   : > { %v674_v45 = vpop.xlane.xlu0 %673 }
 0x407   : > { %v682_v48 = vmul.f32 0.00390625, %v674_v45 }
 0x409   : > { %v686_v54 = vmul.f32 %v682_v48, %v682_v48  ;;  %v693_v47 = vsub.f32 %v1793_v24, %v682_v48  ;;  %v694_v49 = vsub.f32 %v1795_v25, %v682_v48  ;;  %v927_v24 = vld [vmem:[#allocation10 + $0x8] sm:$0xff] }
 0x40a   : > { %v680_v23 = vpop.xlane.xlu0 %679 }
 0x40b   : > { %v684_v51 = vmul.f32 0.00390625, %v680_v23 }
 0x40d   : > { %v688_v57 = vsub.f32 %v684_v51, %v686_v54 }
 0x40f   : > { %v690_v27 = vmax.f32 %v688_v57, 0.0 }
 0x411   : > { %v696_v33 = vadd.f32 1e-05, %v690_v27 }
 0x413   : > { %1214 = vrsqrt.f32 %v696_v33 }
 0x420   : > { %v1215_v46 = vpop.eup %1214 }
 0x421   : > { %v701_v34 = vmul.f32 %v1215_v46, %v693_v47  ;;  %v702_v36 = vmul.f32 %v1215_v46, %v694_v49 }
 0x423   : > { %v705_v61 = vmul.f32 %v701_v34, %v659_v50  ;;  %v706_v62 = vmul.f32 %v702_v36, %v660_v52 }
 0x425   : > { %v709_v5 = vadd.f32 %v705_v61, %v663_v60  ;;  %v710_v11 = vadd.f32 %v706_v62, %v664_v2 }
 0x461   : > { %v932_v31 = vpop.xlane.xlu1 %931 }
 0x462   : > { %v936_v35 = vmul.f32 0.00390625, %v932_v31 }
 0x463   : > { %v935_v4 = vpop.xlane.xlu0 %934 }
 0x464   : > { %v938_v38 = vmul.f32 %v936_v35, %v936_v35  ;;  %v937_v40 = vmul.f32 0.00390625, %v935_v4  ;;  %v941_v53 = vsub.f32 %v922_v18, %v936_v35  ;;  %v942_v55 = vsub.f32 %v923_v37, %v936_v35 }
 0x466   : > { %v939_v41 = vsub.f32 %v937_v40, %v938_v38 }
 0x468   : > { %v940_v43 = vmax.f32 %v939_v41, 0.0 }
 0x46a   : > { %v943_v44 = vadd.f32 1e-05, %v940_v43 }
 0x46c   : > { %1216 = vrsqrt.f32 %v943_v44 }
 0x479   : > { %v1217_v56 = vpop.eup %1216 }
 0x47a   : > { %v945_v63 = vmul.f32 %v1217_v56, %v941_v53  ;;  %v946_v1 = vmul.f32 %v1217_v56, %v942_v55 }
 0x47c   : > { %v947_v0 = vmul.f32 %v945_v63, %v924_v58  ;;  %v948_v25 = vmul.f32 %v946_v1, %v925_v59 }
 0x47e   : > { %v949_v14 = vadd.f32 %v947_v0, %v926_v3  ;;  %v950_v6 = vadd.f32 %v948_v25, %v927_v24 }
 0x480   : > { %v951_v16 = vadd.f32 %v949_v14, %v709_v5  ;;  %v952_v7 = vadd.f32 %v950_v6, %v710_v11 }
 0x482   : > { %v953_v20 = vmax.f32 %v951_v16, 0.0  ;;  %v954_v9 = vmax.f32 %v952_v7, 0.0 }
 0x484   : > { %955 = vst [vmem:[%s389_s30] sm:$0xff] %v953_v20  ;;  %956 = vst [vmem:[%s389_s30 + $0x8] sm:$0xff] %v954_v9 }
 0x485 PF: > { %s22_s27 = sadd.s32 1, %s1396_s27  }
 0x486   : > { %p19_p2 = scmp.ge.s32.totalorder %s22_s27, 4  }
 0x488   :  { %21 = sbr.rel (!%p19_p2) target bundleno = 4 (0x4), region = 107 }
 0x48d   :  { %978 = vsyncpa [#allocation3], 1 }
 0x48e   :  { %980 = vsyncpa [#allocation3 + $0x1], 1 }
 0x48f   :  { %981 = vsyncpa [#allocation5], 1 }
 0x490   :  { %982 = vsyncpa [#allocation8], 1 }
 0x491   :  { %983 = vsyncpa [#allocation11], 1 }

</bundles_post_ra>
